<compile_context>
chip_gen: v5e
topology: v5e:2x2
jax: 0.10.0
libtpu: 0.0.40
codegen_flags: <defaults>
</compile_context>

<pallas_src>
import math

import jax
import jax.numpy as jnp
from jax.experimental import pallas as pl
from jax.experimental.pallas import tpu as pltpu


def _round_up(x, m):
    return (x + m - 1) // m * m


def _divisor_tile(total, target, multiple):
    """Largest multiple of `multiple` dividing `total`, <= max(target, multiple).
    `total` must itself be a multiple of `multiple`."""
    t = max(multiple, (min(target, total) // multiple) * multiple)
    while total % t:
        t -= multiple
    return t


# ---------------------------------------------------------------------------
# Kernels
# ---------------------------------------------------------------------------
def _generator_kernel(x_ref, w_ref, b_ref, o_ref):
    # x: (TM, d_model) bf16, w: (d_model, TV) bf16, b: (1, TV) f32 -> (TM, TV)
    acc = jnp.dot(x_ref[...], w_ref[...], preferred_element_type=jnp.float32)
    o_ref[...] = (acc + b_ref[...]).astype(o_ref.dtype)


def _generator_kernel_ktiled(x_ref, w_ref, b_ref, o_ref, acc_ref):
    # Same contraction with d_model split over the innermost ("arbitrary")
    # grid axis; partials accumulate in an f32 VMEM scratch.
    @pl.when(pl.program_id(2) == 0)
    def _():
        acc_ref[...] = jnp.zeros_like(acc_ref)

    acc_ref[...] += jnp.dot(x_ref[...], w_ref[...],
                            preferred_element_type=jnp.float32)

    @pl.when(pl.program_id(2) == pl.num_programs(2) - 1)
    def _():
        o_ref[...] = (acc_ref[...] + b_ref[...]).astype(o_ref.dtype)


# ---------------------------------------------------------------------------
# Wrapper
# ---------------------------------------------------------------------------
def prepare_generator_params(w, b, compute_dtype=jnp.bfloat16):
    """One-time parameter preparation (at module init, not per forward call).

    w: (d_model, vocab)  -- transposed vs. torch nn.Linear's (vocab, d_model)
    b: (vocab,)
    Pads vocab up to a multiple of 128 (zero columns) and casts the weight to
    the MXU compute dtype, so the forward never copies the weight again.
    Returns (w_padded_bf16, b_padded_2d_f32, vocab).
    """
    d_model, vocab = w.shape
    v_pad = _round_up(vocab, 128)
    if v_pad != vocab:
        w = jnp.pad(w, ((0, 0), (0, v_pad - vocab)))
        b = jnp.pad(b, ((0, v_pad - vocab),))
    return (w.astype(compute_dtype),
            b.reshape(1, v_pad).astype(jnp.float32),
            vocab)


def generator_forward(x, w_p, b_p, vocab, *, reshape=True, tm=256, tv=1024,
                      out_dtype=None, vmem_budget_bytes=40 * 1024 * 1024):
    """scores = x @ W + b ; if reshape: scores.view(-1, vocab).

    x:   (..., d_model) float
    w_p: (d_model, v_pad) bf16, b_p: (1, v_pad) f32  (prepare_generator_params)
    """
    *lead, d_model = x.shape
    assert w_p.shape[0] == d_model
    v_pad = w_p.shape[1]
    n = math.prod(lead)

    compute_dtype = w_p.dtype
    out_dtype = out_dtype or x.dtype
    itm_c = jnp.dtype(compute_dtype).itemsize
    itm_o = jnp.dtype(out_dtype).itemsize

    # ---- tile selection against the double-buffered VMEM footprint ----------
    def footprint(tm_, tv_, kd_, ktiled_):
        per_step = (tm_ * kd_ * itm_c        # x tile
                    + kd_ * tv_ * itm_c      # weight tile
                    + tv_ * 4                # bias tile (f32)
                    + tm_ * tv_ * itm_o)     # output tile
        acc = tm_ * tv_ * 4 if ktiled_ else 0
        return 2 * per_step + acc            # x2 for double buffering

    # token tile: multiple of 16 (bf16 sublane packing), clamped to call size
    tm = max(16, (min(tm, _round_up(n, 16)) // 16) * 16)
    # vocab tile: lane-dense multiple of 128 dividing the padded vocab
    tv = _divisor_tile(v_pad, max(tv, 128), 128)

    kd, ktiled = d_model, False
    if footprint(tm, tv, kd, False) > vmem_budget_bytes and d_model % 128 == 0:
        # K-tile the contraction for very large d_model (v7x: 64 MiB VMEM).
        kd = _divisor_tile(d_model, d_model // 2, 128)
        while kd > 128 and footprint(tm, tv, kd, True) > vmem_budget_bytes:
            kd = _divisor_tile(d_model, kd - 128, 128)
        ktiled = kd < d_model
    while tv > 128 and footprint(tm, tv, kd, ktiled) > vmem_budget_bytes:
        tv = _divisor_tile(v_pad, tv - 128, 128)
    while tm > 16 and footprint(tm, tv, kd, ktiled) > vmem_budget_bytes:
        tm = max(16, (tm // 2 // 16) * 16)

    # ---- pad only the token dim (weight was padded once at init) -----------
    x2 = x.reshape(n, d_model).astype(compute_dtype)
    n_pad = _round_up(n, tm)
    if n_pad != n:
        x2 = jnp.pad(x2, ((0, n_pad - n), (0, 0)))

    v_tiles, n_tiles = v_pad // tv, n_pad // tm

    # ---- grid / specs: vocab OUTER so W streams once, tokens inner ---------
    if not ktiled:
        grid = (v_tiles, n_tiles)
        in_specs = [
            pl.BlockSpec((tm, d_model), lambda j, i: (i, 0)),   # activations
            pl.BlockSpec((d_model, tv), lambda j, i: (0, j)),   # weight cols
            pl.BlockSpec((1, tv), lambda j, i: (0, j)),         # bias cols
        ]
        out_specs = pl.BlockSpec((tm, tv), lambda j, i: (i, j))
        scratch_shapes = []
        kernel = _generator_kernel
        semantics = ("parallel", "parallel")
    else:
        grid = (v_tiles, n_tiles, d_model // kd)
        in_specs = [
            pl.BlockSpec((tm, kd), lambda j, i, k: (i, k)),
            pl.BlockSpec((kd, tv), lambda j, i, k: (k, j)),
            pl.BlockSpec((1, tv), lambda j, i, k: (0, j)),
        ]
        out_specs = pl.BlockSpec((tm, tv), lambda j, i, k: (i, j))
        scratch_shapes = [pltpu.VMEM((tm, tv), jnp.float32)]
        kernel = _generator_kernel_ktiled
        semantics = ("parallel", "parallel", "arbitrary")

    fp = footprint(tm, tv, kd, ktiled)
    vmem_limit = int(min(max(fp + (8 << 20), 32 << 20), 100 << 20))

    # HBM traffic of the chosen schedule (W streams once on the non-K path).
    bytes_accessed = (n_pad * d_model * itm_c * v_tiles
                      + d_model * v_pad * itm_c * (n_tiles if ktiled else 1)
                      + v_pad * 4 * n_tiles
                      + n_pad * v_pad * itm_o)
    cost = pl.CostEstimate(flops=2 * n_pad * d_model * v_pad,
                           transcendentals=0,
                           bytes_accessed=bytes_accessed)

    out = pl.pallas_call(
        kernel,
        out_shape=jax.ShapeDtypeStruct((n_pad, v_pad), out_dtype),
        grid_spec=pltpu.PrefetchScalarGridSpec(
            num_scalar_prefetch=0,
            grid=grid,
            in_specs=in_specs,
            out_specs=out_specs,
            scratch_shapes=scratch_shapes,
        ),
        compiler_params=pltpu.CompilerParams(
            dimension_semantics=semantics,
            vmem_limit_bytes=vmem_limit),
        cost_estimate=cost,
    )(x2, w_p, b_p)

    if n_pad != n or v_pad != vocab:
        out = out[:n, :vocab]        # only for awkward (non-multiple) shapes
    if reshape:
        return out                   # == scores.view(-1, vocab)
    return out.reshape(*lead, vocab)


if __name__ == "__main__":
    # Small shapes consistent with the module: batch=2, seq=8, d_model=32, vocab=128.
    B, T, d_model, vocab = 2, 8, 32, 128
    key = jax.random.PRNGKey(0)
    kx, kw, kb = jax.random.split(key, 3)
    x = jax.random.normal(kx, (B, T, d_model), jnp.float32)
    limit = math.sqrt(6.0 / (d_model + vocab))            # xavier_uniform
    w = jax.random.uniform(kw, (d_model, vocab), jnp.float32, -limit, limit)
    b = 0.01 * jax.random.normal(kb, (vocab,), jnp.float32)

    w_p, b_p, vocab_ = prepare_generator_params(w, b)     # once, at "init"

    out = generator_forward(x, w_p, b_p, vocab_, reshape=True)
    out = jax.block_until_ready(out)
    ref = x.reshape(-1, d_model) @ w + b
    assert out.shape == (B * T, vocab), out.shape
    # bf16 operands -> looser tolerance than a pure-f32 reference
    assert jnp.allclose(out, ref, atol=2e-2, rtol=2e-2), float(
        jnp.max(jnp.abs(out - ref)))

    out3 = generator_forward(x, w_p, b_p, vocab_, reshape=False)
    out3 = jax.block_until_ready(out3)
    assert out3.shape == (B, T, vocab), out3.shape
    assert jnp.allclose(out3.reshape(-1, vocab), ref, atol=2e-2, rtol=2e-2)

    # Exercise the K-tiled (large d_model / v7x VMEM) path with a tiny budget.
    d2, v2 = 256, 512
    k2 = jax.random.PRNGKey(1)
    kx2, kw2, kb2 = jax.random.split(k2, 3)
    x_b = jax.random.normal(kx2, (B, T, d2), jnp.float32)
    lim2 = math.sqrt(6.0 / (d2 + v2))
    w_b = jax.random.uniform(kw2, (d2, v2), jnp.float32, -lim2, lim2)
    b_b = 0.01 * jax.random.normal(kb2, (v2,), jnp.float32)
    w_bp, b_bp, v2_ = prepare_generator_params(w_b, b_b)
    out2 = generator_forward(x_b, w_bp, b_bp, v2_, reshape=True,
                             vmem_budget_bytes=400_000)
    out2 = jax.block_until_ready(out2)
    ref2 = x_b.reshape(-1, d2) @ w_b + b_b
    assert out2.shape == (B * T, v2), out2.shape
    assert jnp.allclose(out2, ref2, atol=3e-2, rtol=3e-2), float(
        jnp.max(jnp.abs(out2 - ref2)))

    print("KERNEL_OK")
</pallas_src>

<mosaic_0001>
module attributes {stable_mosaic.version = 11 : i64} {
  func.func @_generator_kernel(%arg0: i32, %arg1: i32, %arg2: memref<16x32xbf16, #tpu.memory_space<vmem>>, %arg3: memref<32x128xbf16, #tpu.memory_space<vmem>>, %arg4: memref<1x128xf32, #tpu.memory_space<vmem>>, %arg5: memref<16x128xf32, #tpu.memory_space<vmem>>) attributes {dimension_semantics = [#tpu.dimension_semantics<parallel>, #tpu.dimension_semantics<parallel>], iteration_bounds = array<i64: 1, 1>, scalar_prefetch = 0 : i64, scratch_operands = 0 : i64, tpu.core_type = #tpu.core_type<tc>, window_params = [{transform_indices = @transform_0, window_bounds = array<i64: 16, 32>}, {transform_indices = @transform_1, window_bounds = array<i64: 32, 128>}, {transform_indices = @transform_2, window_bounds = array<i64: 1, 128>}, {transform_indices = @transform_3, window_bounds = array<i64: 16, 128>}]} {
    %c0 = arith.constant 0 : index
    %c0_0 = arith.constant 0 : index
    %0 = vector.load %arg2[%c0, %c0_0] : memref<16x32xbf16, #tpu.memory_space<vmem>>, vector<16x32xbf16>
    %c0_1 = arith.constant 0 : index
    %c0_2 = arith.constant 0 : index
    %1 = vector.load %arg3[%c0_1, %c0_2] : memref<32x128xbf16, #tpu.memory_space<vmem>>, vector<32x128xbf16>
    %cst = arith.constant dense<0.000000e+00> : vector<16x128xf32>
    %2 = tpu.matmul %0, %1, %cst {dimension_numbers = #tpu.dot_dimension_numbers<[1], [0], [0], [1], [0, 0, 1, 1], [], []>} : vector<16x32xbf16>, vector<32x128xbf16>, vector<16x128xf32> -> vector<16x128xf32>
    %c0_3 = arith.constant 0 : index
    %c0_4 = arith.constant 0 : index
    %3 = vector.load %arg4[%c0_3, %c0_4] : memref<1x128xf32, #tpu.memory_space<vmem>>, vector<1x128xf32>
    %4 = vector.broadcast %3 : vector<1x128xf32> to vector<16x128xf32>
    %5 = arith.addf %2, %4 : vector<16x128xf32>
    %c0_5 = arith.constant 0 : index
    %c0_6 = arith.constant 0 : index
    %6 = vector.load %arg5[%c0_5, %c0_6] : memref<16x128xf32, #tpu.memory_space<vmem>>, vector<16x128xf32>
    tpu.vector_store %arg5[%c0_5, %c0_6], %5 {strides = array<i32>} : memref<16x128xf32, #tpu.memory_space<vmem>>, vector<16x128xf32>,
    return
  }
  func.func @transform_0(%arg0: i32, %arg1: i32) -> (i32, i32) {
    %c0_i32 = arith.constant 0 : i32
    %c0_i32_0 = arith.constant 0 : i32
    return %arg1, %c0_i32 : i32, i32
  }
  func.func @transform_1(%arg0: i32, %arg1: i32) -> (i32, i32) {
    %c0_i32 = arith.constant 0 : i32
    %c0_i32_0 = arith.constant 0 : i32
    return %c0_i32, %arg0 : i32, i32
  }
  func.func @transform_2(%arg0: i32, %arg1: i32) -> (i32, i32) {
    %c0_i32 = arith.constant 0 : i32
    %c0_i32_0 = arith.constant 0 : i32
    return %c0_i32, %arg0 : i32, i32
  }
  func.func @transform_3(%arg0: i32, %arg1: i32) -> (i32, i32) {
    %c0_i32 = arith.constant 0 : i32
    return %arg1, %arg0 : i32, i32
  }
}

</mosaic_0001>

<bundles_post_ra>
// kernel: tpu_custom_call.1
= control target key start
LH: loop header
LB: loop body
LE: loop exit
PB: predicated region body
PF: predicated region fallthrough
CT: control target
= control target key end

     0   :  { %8 = vsyncpa [#allocation3], 0  ;;  %s256_s0 = inlined_call_operand.hbm [shape: bf16[16,32], index: 0, kind: input, shape index: {}]   ;;  %s257_s1 = inlined_call_operand.hbm [shape: bf16[32,128], index: 1, kind: input, shape index: {}]   ;;  %s258_s2 = inlined_call_operand.vmem [shape: f32[1,128], index: 2, kind: input, shape index: {}]   ;;  %s259_s3 = inlined_call_operand.hbm [shape: f32[16,128], index: 3, kind: output, shape index: {}]  }
   0x1   :  { %9 = vsyncpa [#allocation6], 0 }
   0x2   :  { %10 = vsyncpa [#allocation4], 0  ;;  %s15_s14 = sshll.u32 %s256_s0, 4  ;;  %s217_s15 = smov [#allocation2]   ;;  %s16_s14 = int_to_ptr.hbm [resolvable:$true] %s15_s14 }
   0x3   :  { %s17_s16 = sshll.u32 %s217_s15, 4  ;;  %s28_s19 = sshll.u32 %s257_s1, 4  ;;  %s18_s16 = int_to_ptr.vmem [resolvable:$true] %s17_s16  ;;  %s29_s19 = int_to_ptr.hbm [resolvable:$true] %s28_s19 }
   0x4   :  { %s218_s20 = smov 64   ;;  %s219_s21 = smov 4  }
   0x5   :  { %23 = dma.hbm_to_vmem [thread:$0]  %s16_s14, 128, %s18_s16, [#allocation3], %s218_s20, %s218_s20, %s219_s21  }
   0x6   :  { %s220_s22 = smov [#allocation5]  }
   0x7   :  { %s30_s23 = sshll.u32 %s220_s22, 4  ;;  %s31_s23 = int_to_ptr.vmem [resolvable:$true] %s30_s23 }
   0x8   :  { %36 = dma.hbm_to_vmem [thread:$0]  %s29_s19, 256, %s31_s23, [#allocation6], %s218_s20, %s218_s20, %s219_s21  }
   0x9   :  { %211 = dma.done.wait [#allocation3], 128  }
   0xa   :  { %212 = vsyncadd [#allocation3], 4294967168 }
   0xb   :  { %213 = dma.done.wait [#allocation6], 256  }
   0xc   :  { %214 = vsyncadd [#allocation6], 4294967040  ;;  %v130_v0 = vld [vmem:[#allocation5 + $0x8] sm:$0xff]  ;;  %v129_v1 = vld [vmem:[#allocation5] sm:$0xff]  ;;  %vm75_vm0 = vcmask 261120   ;;  %s221_s24 = smov [#allocation7]  }
   0xd   :  { %85 = vmatpush.bf16.msra.mxu0 %v130_v0  ;;  %v128_v2 = vld [vmem:[#allocation2] sm:$0xff]  ;;  %s99_s25 = sshll.u32 %s221_s24, 4  ;;  %s101_s28 = sshll.u32 %s259_s3, 4  ;;  %s100_s25 = int_to_ptr.vmem [resolvable:$true] %s99_s25  ;;  %s102_s28 = int_to_ptr.hbm [resolvable:$true] %s101_s28 }
   0xe   :  { %v138_v3 = vld [vmem:[%s258_s2] ss:$0 sm:$0xff]  ;;  %s222_s29 = smov 128   ;;  %s223_s30 = smov 8  }
  0x11   :  { %86 = vmatpush.bf16.msra.mxu0 %v129_v1 }
  0x14   :  { %127 = vmatmul.msk.bf16.vlgmr.msra.gmra.mxu0 %vm75_vm0, %v128_v2 }
  0x91   :  { %v88_v4 = vpop.f32.mrf.mxu0 }
  0x92   :  { %v89_v5 = vadd.f32 %v138_v3, %v88_v4 }
  0x94   :  { %93 = vst [vmem:[#allocation7] sm:$0xff] %v89_v5 }
  0x99   :  { %v90_v6 = vpop.f32.mrf.mxu0 }
  0x9a   :  { %v91_v7 = vadd.f32 %v138_v3, %v90_v6 }
  0x9c   :  { %94 = vst [vmem:[#allocation7 + $0x8] sm:$0xff] %v91_v7 }
  0x9d   :  { %107 = dma.vmem_to_hbm [thread:$0]  %s100_s25, 256, %s102_s28, [#allocation4], %s222_s29, %s222_s29, %s223_s30  }
  0x9e   :  { %215 = dma.done.wait [#allocation4], 256  }
  0x9f   :  { %216 = vsyncadd [#allocation4], 4294967040 }
  0xa0   :  { %112 = vsyncpa [#allocation3], 1 }
  0xa1   :  { %113 = vsyncpa [#allocation6], 1 }
  0xa2   :  { %114 = vsyncpa [#allocation4], 1 }

</bundles_post_ra>
